<compile_context>
chip_gen: v5e
topology: v5e:2x2
jax: 0.10.0
libtpu: 0.0.40
codegen_flags: <defaults>
</compile_context>

<pallas_src>
import functools
import math

import jax
import jax.numpy as jnp
import numpy as np
from jax.experimental import pallas as pl
from jax.experimental.pallas import tpu as pltpu

_LANE = 128   # lane tile (last dim)
_SUB = 16     # bf16 sublane packing (second-minor dim)


def _round_up(v, m):
    return (v + m - 1) // m * m


# ---------------------------------------------------------------------------
# Kernel: fused 3x3 conv (MXU matmul) + bias + LeakyReLU(0.2).
# One batch image per grid step; channel-major, spatially-flattened layout.
# ---------------------------------------------------------------------------
def _conv3x3_bias_lrelu_kernel(tap_map, lout, cin_p, use_concat,
                               planes_ref, w_ref, b_ref, o_ref):
    """planes_ref: (1, P, Cin_p, L)   bf16; P=1 (stride 1) or 4 parity planes (stride 2)
       w_ref:      (Cout_p, 9*Cin_p)  bf16 packed tap-major / channel-minor, pre-scaled
       b_ref:      (Cout_p, 1)        f32
       o_ref:      (1, Cout_p, Lout)  lane-dense (Lout % 128 == 0) flattened-spatial out
    """
    n_planes = planes_ref.shape[1]
    # Load each input plane once; taps below are unit-stride lane-offset views.
    planes = [planes_ref[0, p] for p in range(n_planes)]                # (Cin_p, L) bf16

    if use_concat:
        # Toy channel counts: fold all 9 taps into K = 9*Cin_p of ONE matmul.
        lhs = jnp.concatenate(
            [planes[p][:, off:off + lout] for p, off in tap_map], axis=0)
        acc = jnp.dot(w_ref[...], lhs, preferred_element_type=jnp.float32)
    else:
        # Production channel counts: accumulate 9 K=Cin_p matmuls in f32 so the
        # (9*Cin_p, Lout) slab is never materialized in VMEM.
        acc = jnp.zeros((w_ref.shape[0], lout), jnp.float32)
        for t, (p, off) in enumerate(tap_map):
            acc += jnp.dot(w_ref[:, t * cin_p:(t + 1) * cin_p],
                           planes[p][:, off:off + lout],
                           preferred_element_type=jnp.float32)

    acc = acc + b_ref[...]                                              # bias (f32)
    y = jnp.maximum(acc, 0.2 * acc)                                     # LeakyReLU(0.2)
    o_ref[0] = y.astype(o_ref.dtype)


def _run_conv(planes, w2d, b2d, lout, tap_map, out_dtype):
    n, n_planes, cin_p, length = planes.shape
    cout_p, k = w2d.shape
    use_concat = cin_p < 32                      # K per tap < 32 -> single big matmul
    kernel = functools.partial(_conv3x3_bias_lrelu_kernel,
                               tuple(tap_map), lout, cin_p, use_concat)

    out_itemsize = int(np.dtype(out_dtype).itemsize)
    in_bytes = int(n_planes * cin_p * length * planes.dtype.itemsize)
    out_bytes = int(cout_p * lout * out_itemsize)
    fixed_bytes = int(w2d.size * w2d.dtype.itemsize + b2d.size * b2d.dtype.itemsize)
    # f32 accumulator (+ 9-tap bf16 slab on the concat path) lives in VMEM too.
    scratch_bytes = cout_p * lout * 4 + (9 * cin_p * lout * 2 if use_concat else 0)
    # Double-buffered in/out blocks + weights + in-kernel temporaries, 2x headroom,
    # capped below v7x's 64 MiB physical VMEM.
    vmem_limit = int(min(48 * 1024 * 1024,
                         max(2 * (2 * (in_bytes + out_bytes) + fixed_bytes + scratch_bytes),
                             16 * 1024 * 1024)))

    cost = pl.CostEstimate(
        flops=int(2 * n * cout_p * 9 * cin_p * lout),
        transcendentals=0,
        bytes_accessed=int(n * (in_bytes + out_bytes) + fixed_bytes))

    return pl.pallas_call(
        kernel,
        out_shape=jax.ShapeDtypeStruct((n, cout_p, lout), out_dtype),
        grid=(n,),
        in_specs=[
            pl.BlockSpec((1, n_planes, cin_p, length), lambda b: (b, 0, 0, 0)),
            pl.BlockSpec((cout_p, k), lambda b: (0, 0)),
            pl.BlockSpec((cout_p, 1), lambda b: (0, 0)),
        ],
        out_specs=pl.BlockSpec((1, cout_p, lout), lambda b: (b, 0, 0)),
        compiler_params=pltpu.CompilerParams(
            dimension_semantics=("parallel",),        # 1 image / TC on v7x megacore
            vmem_limit_bytes=vmem_limit),
        cost_estimate=cost,
    )(planes, w2d, b2d)


def _pack_weight(w_oihw, scale, cin_p, cout_p):
    """OIHW -> (Cout_p, 9*Cin_p) bf16, tap-major / channel-minor, equalized-LR scaled."""
    cout, cin = w_oihw.shape[:2]
    wt = jnp.transpose(w_oihw, (0, 2, 3, 1)) * scale                    # (O, 3, 3, I) f32
    wt = jnp.pad(wt, ((0, cout_p - cout), (0, 0), (0, 0), (0, cin_p - cin)))
    return wt.reshape(cout_p, 9 * cin_p).astype(jnp.bfloat16)


def _pack_bias(bias, cout_p):
    return jnp.pad(bias, (0, cout_p - bias.shape[0])).astype(jnp.float32).reshape(cout_p, 1)


def scaled_conv3x3_lrelu_stride1(x_nchw, weight_oihw, bias):
    """LeakyReLU(0.2)(conv2d(x, w*scale, b, k=3, s=1, p=1)).
    Input NCHW (channels may already be zero-padded); output is bf16 NCHW with the
    channel dim still padded to a multiple of 16 (fed straight into the stride-2 conv)."""
    n, cin_x, h, w = x_nchw.shape
    cout, cin_w = weight_oihw.shape[:2]
    cin_p = _round_up(max(cin_x, cin_w), _SUB)
    cout_p = _round_up(cout, _SUB)

    wp = w + 2                      # 1 col of zero pad left/right
    lout = h * wp                   # flattened output rows; columns >= w are junk
    lout_p = _round_up(lout, _LANE)
    max_off = 2 * wp + 2
    real_len = (h + 2) * wp         # 1 row of zero pad top/bottom
    length = _round_up(max(lout_p + max_off, real_len), _LANE)

    xb = x_nchw.astype(jnp.bfloat16)
    xp = jnp.pad(xb, ((0, 0), (0, cin_p - cin_x), (1, 1), (1, 1)))
    planes = xp.reshape(n, 1, cin_p, real_len)
    planes = jnp.pad(planes, ((0, 0), (0, 0), (0, 0), (0, length - real_len)))

    scale = math.sqrt(2.0 / (cin_w * 9))                # equalized-LR scale
    w2d = _pack_weight(weight_oihw, scale, cin_p, cout_p)
    b2d = _pack_bias(bias, cout_p)

    # Tap (kh, kw) of output pixel r = i*wp + j lives at flat index r + kh*wp + kw.
    tap_map = [(0, kh * wp + kw) for kh in range(3) for kw in range(3)]
    y = _run_conv(planes, w2d, b2d, lout_p, tap_map, out_dtype=jnp.bfloat16)
    # Crop junk spatial columns only; keep the zero-padded channels (consumed as-is
    # by the stride-2 conv whose packed weight is zero on those input channels).
    return y[:, :, :lout].reshape(n, cout_p, h, wp)[:, :, :, :w]


def scaled_conv3x3_lrelu_stride2(x_nchw, weight_oihw, bias):
    """LeakyReLU(0.2)(conv2d(x, w*scale, b, k=3, s=2, p=1)); accepts channel-padded
    NCHW input, returns f32 NCHW cropped to the true output channels."""
    n, cin_x, h, w = x_nchw.shape
    assert h % 2 == 0 and w % 2 == 0, "stride-2 path expects even spatial dims"
    cout, cin_w = weight_oihw.shape[:2]
    cin_p = _round_up(max(cin_x, cin_w), _SUB)
    cout_p = _round_up(cout, _SUB)

    ho, wo = h // 2, w // 2
    hpp, wpp = ho + 2, wo + 1       # parity-plane dims of the padded input
    lout = ho * wpp
    lout_p = _round_up(lout, _LANE)
    max_off = wpp + 1
    real_len = hpp * wpp
    length = _round_up(max(lout_p + max_off, real_len), _LANE)

    # Pad (1 top, 3 bottom, 1 left/right) then split into 4 even/odd parity planes
    # so the stride-2 taps become unit-stride slices inside the kernel.
    xb = x_nchw.astype(jnp.bfloat16)
    xp = jnp.pad(xb, ((0, 0), (0, cin_p - cin_x), (1, 3), (1, 1)))
    planes = jnp.stack([xp[:, :, p::2, q::2] for p in (0, 1) for q in (0, 1)], axis=1)
    planes = planes.reshape(n, 4, cin_p, real_len)
    planes = jnp.pad(planes, ((0, 0), (0, 0), (0, 0), (0, length - real_len)))

    scale = math.sqrt(2.0 / (cin_w * 9))
    w2d = _pack_weight(weight_oihw, scale, cin_p, cout_p)
    b2d = _pack_bias(bias, cout_p)

    # Tap (kh, kw): parity plane (kh%2, kw%2), flat offset (kh//2)*wpp + (kw//2).
    tap_map = [((kh % 2) * 2 + (kw % 2), (kh // 2) * wpp + (kw // 2))
               for kh in range(3) for kw in range(3)]
    y = _run_conv(planes, w2d, b2d, lout_p, tap_map, out_dtype=jnp.float32)
    return y[:, :cout, :lout].reshape(n, cout, ho, wpp)[:, :, :, :wo]


def init_discriminator_block_params(key, in_channel, out_channel):
    k1, k2, k3, k4 = jax.random.split(key, 4)
    return {
        # ScaledConv2d(in, out, k=3): weight ~ N(0,1); small synthetic bias.
        "w1": jax.random.normal(k1, (out_channel, in_channel, 3, 3), jnp.float32),
        "b1": 0.1 * jax.random.normal(k2, (out_channel,), jnp.float32),
        # Downsample's ScaledConv2d(out, out, k=3, stride=2)
        "w2": jax.random.normal(k3, (out_channel, out_channel, 3, 3), jnp.float32),
        "b2": 0.1 * jax.random.normal(k4, (out_channel,), jnp.float32),
    }


@functools.partial(jax.jit, static_argnames=("downsample",))
def discriminator_block_forward(x_nchw, params, downsample=True):
    """PyTorch-equivalent forward. Input/output are NCHW like the nn.Module."""
    cout = params["w1"].shape[0]
    y = scaled_conv3x3_lrelu_stride1(x_nchw, params["w1"], params["b1"])
    if downsample:
        return scaled_conv3x3_lrelu_stride2(y, params["w2"], params["b2"])
    return y[:, :cout].astype(jnp.float32)


def _reference_forward(x_nchw, params, downsample=True):
    """Plain-JAX (lax.conv, f32) reference of the same math, for a correctness check."""
    def conv(x, w, b, stride):
        y = jax.lax.conv_general_dilated(
            x, w, window_strides=(stride, stride), padding=((1, 1), (1, 1)),
            dimension_numbers=("NCHW", "OIHW", "NCHW"))
        y = y + b[None, :, None, None]
        return jnp.where(y >= 0, y, 0.2 * y)

    cin = x_nchw.shape[1]
    cout = params["w1"].shape[0]
    y = conv(x_nchw, params["w1"] * math.sqrt(2.0 / (cin * 9)), params["b1"], 1)
    if downsample:
        y = conv(y, params["w2"] * math.sqrt(2.0 / (cout * 9)), params["b2"], 2)
    return y


if __name__ == "__main__":
    key = jax.random.PRNGKey(0)
    k_x, k_p = jax.random.split(key)

    # Small shapes consistent with the module: batch=2, in_channel=4,
    # out_channel=8, spatial=16. Output (downsample=True): (2, 8, 8, 8).
    in_channel, out_channel = 4, 8
    x = jax.random.normal(k_x, (2, in_channel, 16, 16), jnp.float32)
    params = init_discriminator_block_params(k_p, in_channel, out_channel)

    out = discriminator_block_forward(x, params, downsample=True)
    out = jax.block_until_ready(out)

    ref = jax.block_until_ready(_reference_forward(x, params, downsample=True))
    # bf16 matmul operands with f32 accumulation -> slightly looser tolerance vs f32 ref.
    np.testing.assert_allclose(np.asarray(out, dtype=np.float32),
                               np.asarray(ref, dtype=np.float32),
                               rtol=5e-2, atol=1e-1)
    assert out.shape == (2, out_channel, 8, 8)
    assert out.dtype == jnp.float32

    print("KERNEL_OK")
</pallas_src>

<mosaic_0001>
module attributes {stable_mosaic.version = 11 : i64} {
  func.func @_conv3x3_bias_lrelu_kernel(%arg0: i32, %arg1: memref<1x1x16x512xbf16, #tpu.memory_space<vmem>>, %arg2: memref<16x144xbf16, #tpu.memory_space<vmem>>, %arg3: memref<16x1xf32, #tpu.memory_space<vmem>>, %arg4: memref<1x16x384xbf16, #tpu.memory_space<vmem>>) attributes {dimension_semantics = [#tpu.dimension_semantics<parallel>], iteration_bounds = array<i64: 2>, scalar_prefetch = 0 : i64, scratch_operands = 0 : i64, tpu.core_type = #tpu.core_type<tc>, window_params = [{transform_indices = @transform_0, window_bounds = array<i64: 1, 1, 16, 512>}, {pipeline_mode = #tpu.pipeline_mode<synchronous>, transform_indices = @transform_1, window_bounds = array<i64: 16, 144>}, {pipeline_mode = #tpu.pipeline_mode<synchronous>, transform_indices = @transform_2, window_bounds = array<i64: 16, 1>}, {transform_indices = @transform_3, window_bounds = array<i64: 1, 16, 384>}]} {
    %c0 = arith.constant 0 : index
    %c0_0 = arith.constant 0 : index
    %c0_1 = arith.constant 0 : index
    %c0_2 = arith.constant 0 : index
    %0 = vector.load %arg1[%c0, %c0_0, %c0_1, %c0_2] : memref<1x1x16x512xbf16, #tpu.memory_space<vmem>>, vector<1x1x16x512xbf16>
    %1 = vector.shape_cast %0 : vector<1x1x16x512xbf16> to vector<16x512xbf16>
    %2 = vector.extract_strided_slice %1 {offsets = [0, 0], sizes = [16, 384], strides = [1, 1]} : vector<16x512xbf16> to vector<16x384xbf16>
    %3 = vector.extract_strided_slice %1 {offsets = [0, 1], sizes = [16, 384], strides = [1, 1]} : vector<16x512xbf16> to vector<16x384xbf16>
    %4 = vector.extract_strided_slice %1 {offsets = [0, 2], sizes = [16, 384], strides = [1, 1]} : vector<16x512xbf16> to vector<16x384xbf16>
    %5 = vector.extract_strided_slice %1 {offsets = [0, 18], sizes = [16, 384], strides = [1, 1]} : vector<16x512xbf16> to vector<16x384xbf16>
    %6 = vector.extract_strided_slice %1 {offsets = [0, 19], sizes = [16, 384], strides = [1, 1]} : vector<16x512xbf16> to vector<16x384xbf16>
    %7 = vector.extract_strided_slice %1 {offsets = [0, 20], sizes = [16, 384], strides = [1, 1]} : vector<16x512xbf16> to vector<16x384xbf16>
    %8 = vector.extract_strided_slice %1 {offsets = [0, 36], sizes = [16, 384], strides = [1, 1]} : vector<16x512xbf16> to vector<16x384xbf16>
    %9 = vector.extract_strided_slice %1 {offsets = [0, 37], sizes = [16, 384], strides = [1, 1]} : vector<16x512xbf16> to vector<16x384xbf16>
    %10 = vector.extract_strided_slice %1 {offsets = [0, 38], sizes = [16, 384], strides = [1, 1]} : vector<16x512xbf16> to vector<16x384xbf16>
    %11 = tpu.concatenate %2, %3, %4, %5, %6, %7, %8, %9, %10 in 0 : vector<16x384xbf16>, vector<16x384xbf16>, vector<16x384xbf16>, vector<16x384xbf16>, vector<16x384xbf16>, vector<16x384xbf16>, vector<16x384xbf16>, vector<16x384xbf16>, vector<16x384xbf16> -> vector<144x384xbf16>
    %c0_3 = arith.constant 0 : index
    %c0_4 = arith.constant 0 : index
    %12 = vector.load %arg2[%c0_3, %c0_4] : memref<16x144xbf16, #tpu.memory_space<vmem>>, vector<16x144xbf16>
    %cst = arith.constant dense<0.000000e+00> : vector<16x384xf32>
    %13 = tpu.matmul %12, %11, %cst {dimension_numbers = #tpu.dot_dimension_numbers<[1], [0], [0], [1], [0, 0, 1, 1], [], []>} : vector<16x144xbf16>, vector<144x384xbf16>, vector<16x384xf32> -> vector<16x384xf32>
    %c0_5 = arith.constant 0 : index
    %c0_6 = arith.constant 0 : index
    %14 = vector.load %arg3[%c0_5, %c0_6] : memref<16x1xf32, #tpu.memory_space<vmem>>, vector<16x1xf32>
    %15 = vector.broadcast %14 : vector<16x1xf32> to vector<16x384xf32>
    %16 = arith.addf %13, %15 : vector<16x384xf32>
    %cst_7 = arith.constant 2.000000e-01 : f32
    %17 = vector.broadcast %cst_7 : f32 to vector<16x384xf32>
    %18 = arith.mulf %17, %16 : vector<16x384xf32>
    %19 = arith.maximumf %16, %18 : vector<16x384xf32>
    %20 = arith.truncf %19 : vector<16x384xf32> to vector<16x384xbf16>
    %c0_8 = arith.constant 0 : index
    %c0_9 = arith.constant 0 : index
    %c0_10 = arith.constant 0 : index
    %21 = vector.load %arg4[%c0_8, %c0_9, %c0_10] : memref<1x16x384xbf16, #tpu.memory_space<vmem>>, vector<1x16x384xbf16>
    %22 = vector.shape_cast %21 : vector<1x16x384xbf16> to vector<16x384xbf16>
    %23 = vector.shape_cast %20 : vector<16x384xbf16> to vector<1x16x384xbf16>
    tpu.vector_store %arg4[%c0_8, %c0_9, %c0_10], %23 {strides = array<i32>} : memref<1x16x384xbf16, #tpu.memory_space<vmem>>, vector<1x16x384xbf16>,
    return
  }
  func.func @transform_0(%arg0: i32) -> (i32, i32, i32, i32) {
    %c0_i32 = arith.constant 0 : i32
    %c0_i32_0 = arith.constant 0 : i32
    %c0_i32_1 = arith.constant 0 : i32
    %c0_i32_2 = arith.constant 0 : i32
    return %arg0, %c0_i32, %c0_i32_0, %c0_i32_1 : i32, i32, i32, i32
  }
  func.func @transform_1(%arg0: i32) -> (i32, i32) {
    %c0_i32 = arith.constant 0 : i32
    %c0_i32_0 = arith.constant 0 : i32
    %c0_i32_1 = arith.constant 0 : i32
    return %c0_i32, %c0_i32_0 : i32, i32
  }
  func.func @transform_2(%arg0: i32) -> (i32, i32) {
    %c0_i32 = arith.constant 0 : i32
    %c0_i32_0 = arith.constant 0 : i32
    %c0_i32_1 = arith.constant 0 : i32
    return %c0_i32, %c0_i32_0 : i32, i32
  }
  func.func @transform_3(%arg0: i32) -> (i32, i32, i32) {
    %c0_i32 = arith.constant 0 : i32
    %c0_i32_0 = arith.constant 0 : i32
    %c0_i32_1 = arith.constant 0 : i32
    return %arg0, %c0_i32, %c0_i32_0 : i32, i32, i32
  }
}

module attributes {stable_mosaic.version = 11 : i64} {
  func.func @_conv3x3_bias_lrelu_kernel(%arg0: i32, %arg1: memref<1x4x16x256xbf16, #tpu.memory_space<vmem>>, %arg2: memref<16x144xbf16, #tpu.memory_space<vmem>>, %arg3: memref<16x1xf32, #tpu.memory_space<vmem>>, %arg4: memref<1x16x128xf32, #tpu.memory_space<vmem>>) attributes {dimension_semantics = [#tpu.dimension_semantics<parallel>], iteration_bounds = array<i64: 2>, scalar_prefetch = 0 : i64, scratch_operands = 0 : i64, tpu.core_type = #tpu.core_type<tc>, window_params = [{transform_indices = @transform_0, window_bounds = array<i64: 1, 4, 16, 256>}, {pipeline_mode = #tpu.pipeline_mode<synchronous>, transform_indices = @transform_1, window_bounds = array<i64: 16, 144>}, {pipeline_mode = #tpu.pipeline_mode<synchronous>, transform_indices = @transform_2, window_bounds = array<i64: 16, 1>}, {transform_indices = @transform_3, window_bounds = array<i64: 1, 16, 128>}]} {
    %c0 = arith.constant 0 : index
    %c0_0 = arith.constant 0 : index
    %c0_1 = arith.constant 0 : index
    %c0_2 = arith.constant 0 : index
    %0 = vector.load %arg1[%c0, %c0_0, %c0_1, %c0_2] : memref<1x4x16x256xbf16, #tpu.memory_space<vmem>>, vector<1x1x16x256xbf16>
    %1 = vector.shape_cast %0 : vector<1x1x16x256xbf16> to vector<16x256xbf16>
    %c0_3 = arith.constant 0 : index
    %c1 = arith.constant 1 : index
    %c0_4 = arith.constant 0 : index
    %c0_5 = arith.constant 0 : index
    %2 = vector.load %arg1[%c0_3, %c1, %c0_4, %c0_5] : memref<1x4x16x256xbf16, #tpu.memory_space<vmem>>, vector<1x1x16x256xbf16>
    %3 = vector.shape_cast %2 : vector<1x1x16x256xbf16> to vector<16x256xbf16>
    %c0_6 = arith.constant 0 : index
    %c2 = arith.constant 2 : index
    %c0_7 = arith.constant 0 : index
    %c0_8 = arith.constant 0 : index
    %4 = vector.load %arg1[%c0_6, %c2, %c0_7, %c0_8] : memref<1x4x16x256xbf16, #tpu.memory_space<vmem>>, vector<1x1x16x256xbf16>
    %5 = vector.shape_cast %4 : vector<1x1x16x256xbf16> to vector<16x256xbf16>
    %c0_9 = arith.constant 0 : index
    %c3 = arith.constant 3 : index
    %c0_10 = arith.constant 0 : index
    %c0_11 = arith.constant 0 : index
    %6 = vector.load %arg1[%c0_9, %c3, %c0_10, %c0_11] : memref<1x4x16x256xbf16, #tpu.memory_space<vmem>>, vector<1x1x16x256xbf16>
    %7 = vector.shape_cast %6 : vector<1x1x16x256xbf16> to vector<16x256xbf16>
    %8 = vector.extract_strided_slice %1 {offsets = [0, 0], sizes = [16, 128], strides = [1, 1]} : vector<16x256xbf16> to vector<16x128xbf16>
    %9 = vector.extract_strided_slice %3 {offsets = [0, 0], sizes = [16, 128], strides = [1, 1]} : vector<16x256xbf16> to vector<16x128xbf16>
    %10 = vector.extract_strided_slice %1 {offsets = [0, 1], sizes = [16, 128], strides = [1, 1]} : vector<16x256xbf16> to vector<16x128xbf16>
    %11 = vector.extract_strided_slice %5 {offsets = [0, 0], sizes = [16, 128], strides = [1, 1]} : vector<16x256xbf16> to vector<16x128xbf16>
    %12 = vector.extract_strided_slice %7 {offsets = [0, 0], sizes = [16, 128], strides = [1, 1]} : vector<16x256xbf16> to vector<16x128xbf16>
    %13 = vector.extract_strided_slice %5 {offsets = [0, 1], sizes = [16, 128], strides = [1, 1]} : vector<16x256xbf16> to vector<16x128xbf16>
    %14 = vector.extract_strided_slice %1 {offsets = [0, 9], sizes = [16, 128], strides = [1, 1]} : vector<16x256xbf16> to vector<16x128xbf16>
    %15 = vector.extract_strided_slice %3 {offsets = [0, 9], sizes = [16, 128], strides = [1, 1]} : vector<16x256xbf16> to vector<16x128xbf16>
    %16 = vector.extract_strided_slice %1 {offsets = [0, 10], sizes = [16, 128], strides = [1, 1]} : vector<16x256xbf16> to vector<16x128xbf16>
    %17 = tpu.concatenate %8, %9, %10, %11, %12, %13, %14, %15, %16 in 0 : vector<16x128xbf16>, vector<16x128xbf16>, vector<16x128xbf16>, vector<16x128xbf16>, vector<16x128xbf16>, vector<16x128xbf16>, vector<16x128xbf16>, vector<16x128xbf16>, vector<16x128xbf16> -> vector<144x128xbf16>
    %c0_12 = arith.constant 0 : index
    %c0_13 = arith.constant 0 : index
    %18 = vector.load %arg2[%c0_12, %c0_13] : memref<16x144xbf16, #tpu.memory_space<vmem>>, vector<16x144xbf16>
    %cst = arith.constant dense<0.000000e+00> : vector<16x128xf32>
    %19 = tpu.matmul %18, %17, %cst {dimension_numbers = #tpu.dot_dimension_numbers<[1], [0], [0], [1], [0, 0, 1, 1], [], []>} : vector<16x144xbf16>, vector<144x128xbf16>, vector<16x128xf32> -> vector<16x128xf32>
    %c0_14 = arith.constant 0 : index
    %c0_15 = arith.constant 0 : index
    %20 = vector.load %arg3[%c0_14, %c0_15] : memref<16x1xf32, #tpu.memory_space<vmem>>, vector<16x1xf32>
    %21 = vector.broadcast %20 : vector<16x1xf32> to vector<16x128xf32>
    %22 = arith.addf %19, %21 : vector<16x128xf32>
    %cst_16 = arith.constant 2.000000e-01 : f32
    %23 = vector.broadcast %cst_16 : f32 to vector<16x128xf32>
    %24 = arith.mulf %23, %22 : vector<16x128xf32>
    %25 = arith.maximumf %22, %24 : vector<16x128xf32>
    %c0_17 = arith.constant 0 : index
    %c0_18 = arith.constant 0 : index
    %c0_19 = arith.constant 0 : index
    %26 = vector.load %arg4[%c0_17, %c0_18, %c0_19] : memref<1x16x128xf32, #tpu.memory_space<vmem>>, vector<1x16x128xf32>
    %27 = vector.shape_cast %26 : vector<1x16x128xf32> to vector<16x128xf32>
    %28 = vector.shape_cast %25 : vector<16x128xf32> to vector<1x16x128xf32>
    tpu.vector_store %arg4[%c0_17, %c0_18, %c0_19], %28 {strides = array<i32>} : memref<1x16x128xf32, #tpu.memory_space<vmem>>, vector<1x16x128xf32>,
    return
  }
  func.func @transform_0(%arg0: i32) -> (i32, i32, i32, i32) {
    %c0_i32 = arith.constant 0 : i32
    %c0_i32_0 = arith.constant 0 : i32
    %c0_i32_1 = arith.constant 0 : i32
    %c0_i32_2 = arith.constant 0 : i32
    return %arg0, %c0_i32, %c0_i32_0, %c0_i32_1 : i32, i32, i32, i32
  }
  func.func @transform_1(%arg0: i32) -> (i32, i32) {
    %c0_i32 = arith.constant 0 : i32
    %c0_i32_0 = arith.constant 0 : i32
    %c0_i32_1 = arith.constant 0 : i32
    return %c0_i32, %c0_i32_0 : i32, i32
  }
  func.func @transform_2(%arg0: i32) -> (i32, i32) {
    %c0_i32 = arith.constant 0 : i32
    %c0_i32_0 = arith.constant 0 : i32
    %c0_i32_1 = arith.constant 0 : i32
    return %c0_i32, %c0_i32_0 : i32, i32
  }
  func.func @transform_3(%arg0: i32) -> (i32, i32, i32) {
    %c0_i32 = arith.constant 0 : i32
    %c0_i32_0 = arith.constant 0 : i32
    %c0_i32_1 = arith.constant 0 : i32
    return %arg0, %c0_i32, %c0_i32_0 : i32, i32, i32
  }
}

</mosaic_0001>

<bundles_post_ra>
// kernel: discriminator_block_forward.2
= control target key start
LH: loop header
LB: loop body
LE: loop exit
PB: predicated region body
PF: predicated region fallthrough
CT: control target
= control target key end

     0   :  { %s602_s12 = smov 0   ;;  %s710_s0 = inlined_call_operand.vmem [shape: bf16[2,1,16,512], index: 0, kind: input, shape index: {}]   ;;  %s711_s1 = inlined_call_operand.vmem [shape: bf16[16,144], index: 1, kind: input, shape index: {}]   ;;  %s712_s2 = inlined_call_operand.vmem [shape: f32[16,1], index: 2, kind: input, shape index: {}]   ;;  %s713_s3 = inlined_call_operand.vmem [shape: bf16[2,16,384], index: 3, kind: output, shape index: {}]  }
   0x1 LB: > { %s501_s13 = sadd.s32 4294967295, %s571_s12   ;;  %p505_p0 = scmp.ge.s32.totalorder %s571_s12, 1  ;;  %s571_s12 = sphi %s602_s12, %s13_s12  }
   0x2   : > { %p137_p1 = scmp.lt.s32.totalorder %s571_s12, 3 }
   0x4   : > { %p138_p2 = pnand %p505_p0, %p137_p1 }
   0x5   : > { %p161_p3 = scmp.lt.s32.totalorder (!%p138_p2), %s501_s13, 1  ;;  %s573_s18 = smov (!%p138_p2), 91  }
   0x6   : > { %141 = sbr.rel (%p138_p2) target bundleno = 367 (0x16f), region = 32  ;;  %s574_s19 = smov (!%p138_p2), 92  }
   0x7   : > { %s575_s20 = smov (!%p138_p2), 108   ;;  %s576_s21 = smov (!%p138_p2), 109  }
   0x8   : > { %s577_s22 = smov (!%p138_p2), 90   ;;  %s578_s23 = smov (!%p138_p2), 110  }
   0x9   : > { %s579_s24 = smov (!%p138_p2), 126   ;;  %s580_s25 = smov (!%p138_p2), 127  }
   0xb   : > { %s715_s13 = smov (!%p161_p3, %s501_s13), 1  ;;  %vm293_vm0 = vcmask 744448   ;;  %vm278_vm1 = vcmask 752640   ;;  %vm263_vm2 = vcmask 883712   ;;  %vm308_vm3 = vcmask 736256   ;;  %v318_v56 = vld [vmem:[%s712_s2 + $0x8] sm:$0xff] }
   0xc   : > { %s538_s14 = sshll.u32 %s715_s13, 5  ;;  %vm248_vm4 = vcmask 891904   ;;  %v543_v35 = vld [vmem:[%s711_s1 + $0x4] sm:$0xf]  ;;  %v529_v36 = vld [vmem:[%s711_s1 + $0x8] sm:$0xf0] }
   0xd   : > { %s165_s17 = scalar_lea.vmem %s710_s0, %s538_s14  ;;  %v662_v37 = vor.u32 %v543_v35, %v529_v36  ;;  %vm338_vm5 = vcmask 130048   ;;  %vm233_vm6 = vcmask 900096   ;;  %vm218_vm7 = vcmask 1031168   ;;  %v317_v57 = vld [vmem:[%s712_s2] sm:$0xff]  ;;  %s545_s11 = smul.u32 24, %s715_s13 }
   0xe   : > { %v511_v0 = vld [vmem:[%s165_s17] sm:$0xf]  ;;  %v541_v1 = vld [vmem:[%s165_s17 + $0xc] sm:$0xf0]  ;;  %v539_v2 = vld [vmem:[%s165_s17 + $0x4] sm:$0xf] }
   0xf   : > { %v616_v3 = vor.u32 %v541_v1, %v511_v0  ;;  %v513_v4 = vld [vmem:[%s165_s17 + $0x10] sm:$0xf0]  ;;  %v540_v6 = vld [vmem:[%s165_s17 + $0xc] sm:$0xf]  ;;  %v521_v7 = vld [vmem:[%s165_s17 + $0x18] sm:$0xf0]  ;;  %s170_s16 = scalar_lea.vmem %s713_s3, %s545_s11 }
  0x10   : > { %v618_v5 = vor.u32 %v539_v2, %v513_v4  ;;  %v519_v8 = vld [vmem:[%s165_s17 + $0x8] sm:$0xf]  ;;  %v542_v9 = vld [vmem:[%s165_s17 + $0x14] sm:$0xf0]  ;;  %v524_v10 = vor.u32 %v540_v6, %v521_v7  ;;  %v581_v58 = vmov 0   ;;  %vm203_vm8 = vcmask 1039360  }
  0x11   : > { %285 = vrot.lane.b32.xlu2 %v616_v3, %s573_s18  ;;  %v623_v11 = vor.u32 %v542_v9, %v519_v8  ;;  %564 = vset.pattern.permute.xlu0 %v581_v58  ;;  %v527_v0 = vld [vmem:[%s711_s1] sm:$0xf]  ;;  %v544_v1 = vld [vmem:[%s711_s1 + $0x4] sm:$0xf0] }
  0x12   : > { %272 = vrot.lane.b32.xlu1 %v618_v5, %s574_s19  ;;  %287 = vrot.lane.b32.xlu0 %v618_v5, %s573_s18  ;;  %v528_v2 = vor.u32 %v544_v1, %v527_v0 }
  0x13   : > { %563 = vset.pattern.permute.xlu2 %v581_v58 }
  0x19   : > { %291 = vrot.lane.b32.xlu2 %v524_v10, %s573_s18 }
  0x1a   : > { %274 = vrot.lane.b32.xlu1 %v623_v11, %s574_s19  ;;  %289 = vrot.lane.b32.xlu0 %v623_v11, %s573_s18 }
  0x21   : > { %270 = vrot.lane.b32.xlu2 %v616_v3, %s574_s19 }
  0x22   : > { %259 = vrot.lane.b32.xlu1 %v623_v11, %s575_s20  ;;  %257 = vrot.lane.b32.xlu0 %v618_v5, %s575_s20 }
  0x29   : > { %244 = vrot.lane.b32.xlu2 %v623_v11, %s576_s21 }
  0x2a   : > { %242 = vrot.lane.b32.xlu1 %v618_v5, %s576_s21  ;;  %276 = vrot.lane.b32.xlu0 %v524_v10, %s574_s19 }
  0x31   : > { %302 = vrot.lane.b32.xlu2 %v618_v5, %s577_s22 }
  0x32   : > { %261 = vrot.lane.b32.xlu1 %v524_v10, %s575_s20  ;;  %255 = vrot.lane.b32.xlu0 %v616_v3, %s575_s20 }
  0x39   : > { %229 = vrot.lane.b32.xlu2 %v623_v11, %s578_s23 }
  0x3a   : > { %227 = vrot.lane.b32.xlu1 %v618_v5, %s578_s23  ;;  %304 = vrot.lane.b32.xlu0 %v623_v11, %s577_s22 }
  0x41   : > { %300 = vrot.lane.b32.xlu2 %v616_v3, %s577_s22 }
  0x42   : > { %246 = vrot.lane.b32.xlu1 %v524_v10, %s576_s21  ;;  %240 = vrot.lane.b32.xlu0 %v616_v3, %s576_s21 }
  0x49   : > { %225 = vrot.lane.b32.xlu2 %v616_v3, %s578_s23 }
  0x4a   : > { %214 = vrot.lane.b32.xlu1 %v623_v11, %s579_s24  ;;  %212 = vrot.lane.b32.xlu0 %v618_v5, %s579_s24 }
  0x51   : > { %199 = vrot.lane.b32.xlu2 %v623_v11, %s580_s25 }
  0x52   : > { %197 = vrot.lane.b32.xlu1 %v618_v5, %s580_s25  ;;  %231 = vrot.lane.b32.xlu0 %v524_v10, %s578_s23 }
  0x59   : > { %195 = vrot.lane.b32.xlu2 %v616_v3, %s580_s25 }
  0x5a   : > { %216 = vrot.lane.b32.xlu1 %v524_v10, %s579_s24  ;;  %210 = vrot.lane.b32.xlu0 %v616_v3, %s579_s24 }
  0x61   : > { %321 = vperm.xlu2 %563, %v317_v57  }
  0x62   : > { %306 = vrot.lane.b32.xlu1 %v524_v10, %s577_s22  ;;  %201 = vrot.lane.b32.xlu0 %v524_v10, %s580_s25 }
  0x6a   : > { %326 = vperm.xlu0 %564, %v318_v56  }
  0x6b   : > { %v286_v12 = vpop.permute.xlu2 %285 }
  0x73   : > { %v292_v13 = vpop.permute.xlu2 %291 }
  0x7b   : > { %v271_v14 = vpop.permute.xlu2 %270 }
  0x83   : > { %v245_v15 = vpop.permute.xlu2 %244 }
  0x84   : > { %v273_v16 = vpop.permute.xlu1 %272  ;;  %v288_v17 = vpop.permute.xlu0 %287 }
  0x85   : > { %v294_v18 = vsel %vm293_vm0, %v286_v12, %v288_v17  ;;  %v279_v19 = vsel %vm278_vm1, %v271_v14, %v273_v16 }
  0x86   : > { %342 = vmatpush.bf16.msra.mxu0 %v294_v18 }
  0x8a   : > { %343 = vmatpush.bf16.msra.mxu0 %v279_v19 }
  0x8b   : > { %v303_v20 = vpop.permute.xlu2 %302 }
  0x8c   : > { %v275_v21 = vpop.permute.xlu1 %274  ;;  %v290_v22 = vpop.permute.xlu0 %289 }
  0x8d   : > { %v295_v23 = vsel %vm293_vm0, %v288_v17, %v290_v22  ;;  %v280_v24 = vsel %vm278_vm1, %v273_v16, %v275_v21  ;;  %v296_v34 = vsel %vm293_vm0, %v290_v22, %v292_v13 }
  0x8e   : > { %370 = vmatpush.bf16.msra.mxu2 %v295_v23 }
  0x92   : > { %371 = vmatpush.bf16.msra.mxu2 %v280_v24 }
  0x93   : > { %v650_v25 = vpop.permute.xlu2 %229 }
  0x94   : > { %v260_v26 = vpop.permute.xlu1 %259  ;;  %v258_v27 = vpop.permute.xlu0 %257 }
  0x95   : > { %v265_v28 = vsel %vm263_vm2, %v258_v27, %v260_v26 }
  0x96   : > { %372 = vmatpush.bf16.msra.mxu2 %v265_v28 }
  0x9b   : > { %v301_v29 = vpop.permute.xlu2 %300 }
  0x9c   : > { %v243_v30 = vpop.permute.xlu1 %242  ;;  %v277_v31 = vpop.permute.xlu0 %276  ;;  %v309_v32 = vsel %vm308_vm3, %v301_v29, %v303_v20 }
  0x9d   : > { %363 = vmatpush.bf16.msra.mxu1 %v309_v32  ;;  %v250_v33 = vsel %vm248_vm4, %v243_v30, %v245_v15  ;;  %v281_v38 = vsel %vm278_vm1, %v275_v21, %v277_v31 }
  0x9e   : > { %373 = vmatpush.bf16.msra.mxu2 %v250_v33 }
  0xa0   : > { %533 = vmatmul.msk.bf16.vlgmr.msra.gmra.mxu1 %vm338_vm5, %v662_v37 }
  0xa1   : > { %398 = vmatpush.bf16.msrb.mxu1 %v296_v34 }
  0xa3   : > { %v226_v51 = vpop.permute.xlu2 %225 }
  0xa4   : > { %v262_v39 = vpop.permute.xlu1 %261  ;;  %v256_v40 = vpop.permute.xlu0 %255 }
  0xa5   : > { %399 = vmatpush.bf16.msrb.mxu1 %v281_v38  ;;  %v264_v41 = vsel %vm263_vm2, %v256_v40, %v258_v27  ;;  %v266_v42 = vsel %vm263_vm2, %v260_v26, %v262_v39 }
  0xa6   : > { %344 = vmatpush.bf16.msra.mxu0 %v264_v41 }
  0xa9   : > { %400 = vmatpush.bf16.msrb.mxu1 %v266_v42 }
  0xab   : > { %v200_v59 = vpop.permute.xlu2 %199 }
  0xac   : > { %v228_v43 = vpop.permute.xlu1 %227  ;;  %v305_v44 = vpop.permute.xlu0 %304 }
  0xad   : > { %v235_v45 = vsel %vm233_vm6, %v228_v43, %v650_v25  ;;  %v310_v46 = vsel %vm308_vm3, %v303_v20, %v305_v44  ;;  %v234_v52 = vsel %vm233_vm6, %v226_v51, %v228_v43 }
  0xae   : > { %374 = vmatpush.bf16.msra.mxu2 %v235_v45  ;;  %391 = vmatpush.bf16.msra.mxu3 %v310_v46 }
  0xb1   : > { %534 = vmatmul.msk.bf16.vlgmr.msra.gmra.mxu3 %vm338_vm5, %v662_v37 }
  0xb3   : > { %v196_v9 = vpop.permute.xlu2 %195 }
  0xb4   : > { %v247_v47 = vpop.permute.xlu1 %246  ;;  %v241_v48 = vpop.permute.xlu0 %240 }
  0xb5   : > { %v249_v49 = vsel %vm248_vm4, %v241_v48, %v243_v30  ;;  %v251_v50 = vsel %vm248_vm4, %v245_v15, %v247_v47 }
  0xb6   : > { %345 = vmatpush.bf16.msra.mxu0 %v249_v49  ;;  %401 = vmatpush.bf16.msrb.mxu1 %v251_v50 }
  0xba   : > { %346 = vmatpush.bf16.msra.mxu0 %v234_v52 }
  0xbb   : > { %v322_v17 = vpop.permute.xlu2 %321 }
  0xbc   : > { %v215_v53 = vpop.permute.xlu1 %214  ;;  %v213_v54 = vpop.permute.xlu0 %212 }
  0xbd   : > { %v220_v55 = vsel %vm218_vm7, %v213_v54, %v215_v53 }
  0xbe   : > { %375 = vmatpush.bf16.msra.mxu2 %v220_v55 }
  0xc4   : > { %v198_v60 = vpop.permute.xlu1 %197  ;;  %v232_v61 = vpop.permute.xlu0 %231 }
  0xc5   : > { %v205_v62 = vsel %vm203_vm8, %v198_v60, %v200_v59  ;;  %v236_v63 = vsel %vm233_vm6, %v650_v25, %v232_v61  ;;  %v204_v10 = vsel %vm203_vm8, %v196_v9, %v198_v60 }
  0xc6   : > { %376 = vmatpush.bf16.msra.mxu2 %v205_v62  ;;  %402 = vmatpush.bf16.msrb.mxu1 %v236_v63 }
  0xca   : > { %377 = vmatpush.bf16.msra.mxu2 %v618_v5 }
  0xcc   : > { %v217_v4 = vpop.permute.xlu1 %216  ;;  %v211_v6 = vpop.permute.xlu0 %210 }
  0xcd   : > { %378 = vmatmul.bf16.vlgmr.msra.gmra.mxu2 %v528_v2  ;;  %v219_v7 = vsel %vm218_vm7, %v211_v6, %v213_v54  ;;  %v221_v8 = vsel %vm218_vm7, %v215_v53, %v217_v4 }
  0xce   : > { %347 = vmatpush.bf16.msra.mxu0 %v219_v7  ;;  %403 = vmatpush.bf16.msrb.mxu1 %v221_v8 }
  0xd2   : > { %348 = vmatpush.bf16.msra.mxu0 %v204_v10 }
  0xd4   : > { %v307_v12 = vpop.permute.xlu1 %306  ;;  %v202_v13 = vpop.permute.xlu0 %201 }
  0xd5   : > { %v311_v14 = vsel %vm308_vm3, %v305_v44, %v307_v12  ;;  %v206_v15 = vsel %vm203_vm8, %v200_v59, %v202_v13 }
  0xd6   : > { %349 = vmatpush.bf16.msra.mxu0 %v616_v3  ;;  %419 = vmatpush.bf16.msrb.mxu3 %v311_v14 }
  0xd7   : > { %404 = vmatpush.bf16.msrb.mxu1 %v206_v15 }
  0xd9   : > { %350 = vmatmul.bf16.vlgmr.msra.gmra.mxu0 %v528_v2  ;;  %535 = vmatmul.msk.bf16.vlgmr.msrb.gmra.mxu3 %vm338_vm5, %v662_v37 }
  0xdb   : > { %405 = vmatpush.bf16.msrb.mxu1 %v623_v11 }
  0xdc   : > { %v327_v3 = vpop.permute.xlu0 %326 }
  0xde   : > { %406 = vmatmul.bf16.vlgmr.msrb.gmra.mxu1 %v528_v2 }
 0x11d   : > { %v365_v5 = vpop.f32.mrf.mxu1 }
 0x125   : > { %v367_v20 = vpop.f32.mrf.mxu1 }
 0x134   : > { %v393_v16 = vpop.f32.mrf.mxu3 }
 0x13c   : > { %v395_v21 = vpop.f32.mrf.mxu3 }
 0x150   : > { %v379_v18 = vpop.f32.mrf.mxu2 }
 0x151   : > { %v380_v19 = vadd.f32 %v379_v18, %v322_v17 }
 0x153   : > { %v394_v22 = vadd.f32 %v393_v16, %v380_v19 }
 0x155   : > { %v427_v26 = vmul.f32 0.2, %v394_v22 }
 0x156   : > { %v351_v23 = vpop.f32.mrf.mxu0 }
 0x157   : > { %v352_v24 = vadd.f32 %v351_v23, %v322_v17  ;;  %v433_v32 = vmax.f32 %v394_v22, %v427_v26 }
 0x158   : > { %v381_v25 = vpop.f32.mrf.mxu2 }
 0x159   : > { %v366_v27 = vadd.f32 %v365_v5, %v352_v24  ;;  %v382_v28 = vadd.f32 %v381_v25, %v327_v3 }
 0x15b   : > { %v426_v29 = vmul.f32 0.2, %v366_v27  ;;  %v407_v11 = vpop.f32.mrf.mxu1  ;;  %v396_v34 = vadd.f32 %v395_v21, %v382_v28 }
 0x15c   : > { %v408_v30 = vadd.f32 %v407_v11, %v322_v17  ;;  %v421_v31 = vpop.f32.mrf.mxu3 }
 0x15d   : > { %v432_v33 = vmax.f32 %v366_v27, %v426_v29  ;;  %v430_v40 = vmul.f32 0.2, %v396_v34 }
 0x15e   : > { %v353_v35 = vpop.f32.mrf.mxu0  ;;  %v422_v36 = vadd.f32 %v421_v31, %v408_v30 }
 0x15f   : > { %v438_v37 = vpack.c.bf16 %v433_v32, %v432_v33  ;;  %v354_v38 = vadd.f32 %v353_v35, %v327_v3  ;;  %v436_v48 = vmax.f32 %v396_v34, %v430_v40 }
 0x160   : > { %v428_v39 = vmul.f32 0.2, %v422_v36 }
 0x161   : > { %442 = vst [vmem:[%s170_s16] sm:$0xff] %v438_v37  ;;  %v368_v41 = vadd.f32 %v367_v20, %v354_v38 }
 0x162   : > { %v434_v42 = vmax.f32 %v422_v36, %v428_v39 }
 0x163   : > { %v429_v43 = vmul.f32 0.2, %v368_v41  ;;  %v409_v44 = vpop.f32.mrf.mxu1 }
 0x164   : > { %v439_v45 = vpack.c.bf16 %v434_v42, %v434_v42  ;;  %v410_v46 = vadd.f32 %v409_v44, %v327_v3  ;;  %v423_v47 = vpop.f32.mrf.mxu3 }
 0x165   : > { %v435_v49 = vmax.f32 %v368_v41, %v429_v43 }
 0x166   : > { %443 = vst [vmem:[%s170_s16 + $0x8] sm:$0xf] %v439_v45  ;;  %v424_v50 = vadd.f32 %v423_v47, %v410_v46 }
 0x167   : > { %v440_v51 = vpack.c.bf16 %v436_v48, %v435_v49 }
 0x168   : > { %v431_v52 = vmul.f32 0.2, %v424_v50 }
 0x169   : > { %444 = vst [vmem:[%s170_s16 + $0xc] sm:$0xff] %v440_v51 }
 0x16a   : > { %v437_v53 = vmax.f32 %v424_v50, %v431_v52 }
 0x16c   : > { %v441_v54 = vpack.c.bf16 %v437_v53, %v437_v53 }
 0x16e   : > { %445 = vst [vmem:[%s170_s16 + $0x14] sm:$0xf] %v441_v54 }
 0x16f PF: > { %s13_s12 = sadd.s32 1, %s571_s12  }
 0x170   : > { %p10_p4 = scmp.ge.s32.totalorder %s13_s12, 4  }
 0x172   :  { %12 = sbr.rel (!%p10_p4) target bundleno = 1 (0x1), region = 62 }

// kernel: discriminator_block_forward.3
= control target key start
LH: loop header
LB: loop body
LE: loop exit
PB: predicated region body
PF: predicated region fallthrough
CT: control target
= control target key end

     0   :  { %s477_s12 = smov 0   ;;  %s544_s0 = inlined_call_operand.vmem [shape: bf16[2,4,16,256], index: 0, kind: input, shape index: {}]   ;;  %s545_s1 = inlined_call_operand.vmem [shape: bf16[16,144], index: 1, kind: input, shape index: {}]   ;;  %s546_s2 = inlined_call_operand.vmem [shape: f32[16,1], index: 2, kind: input, shape index: {}]   ;;  %s547_s3 = inlined_call_operand.vmem [shape: f32[2,16,128], index: 3, kind: output, shape index: {}]  }
   0x1 LB: > { %s365_s13 = sadd.s32 4294967295, %s451_s12   ;;  %p369_p0 = scmp.ge.s32.totalorder %s451_s12, 1  ;;  %s451_s12 = sphi %s477_s12, %s13_s12  }
   0x2   : > { %p137_p1 = scmp.lt.s32.totalorder %s451_s12, 3 }
   0x4   : > { %p138_p2 = pnand %p369_p0, %p137_p1 }
   0x5   : > { %p161_p3 = scmp.lt.s32.totalorder (!%p138_p2), %s365_s13, 1  ;;  %s453_s18 = smov (!%p138_p2), 119  }
   0x6   : > { %141 = sbr.rel (%p138_p2) target bundleno = 315 (0x13b), region = 32  ;;  %s454_s19 = smov (!%p138_p2), 127  }
   0x7   : > { %s455_s20 = smov (!%p138_p2), 118  }
   0xb   : > { %s549_s13 = smov (!%p161_p3, %s365_s13), 1  ;;  %vm230_vm0 = vcmask 973824   ;;  %v251_v23 = vld [vmem:[%s546_s2] sm:$0xff]  ;;  %v252_v24 = vld [vmem:[%s546_s2 + $0x8] sm:$0xff]  ;;  %v456_v26 = vmov 0   ;;  %vm202_vm1 = vcmask 1039360  }
   0xc   : > { %s419_s14 = sshll.u32 %s549_s13, 6  ;;  %442 = vset.pattern.permute.xlu1 %v456_v26  ;;  %443 = vset.pattern.permute.xlu2 %v456_v26  ;;  %vm246_vm2 = vcmask 965632   ;;  %v428_v35 = vld [vmem:[%s545_s1 + $0x4] sm:$0xf]  ;;  %v412_v36 = vld [vmem:[%s545_s1 + $0x8] sm:$0xf0] }
   0xd   : > { %s491_s17 = scalar_lea.vmem %s544_s0, %s419_s14  ;;  %444 = vset.pattern.permute.xlu0 %v456_v26  ;;  %v415_v40 = vor.u32 %v428_v35, %v412_v36  ;;  %vm272_vm3 = vcmask 130048   ;;  %v410_v42 = vld [vmem:[%s545_s1] sm:$0xf]  ;;  %v429_v43 = vld [vmem:[%s545_s1 + $0x4] sm:$0xf0]  ;;  %s420_s6 = sshll.u32 %s549_s13, 4 }
   0xe   : > { %v386_v0 = vld [vmem:[%s491_s17 + $0x10] sm:$0xf]  ;;  %v424_v1 = vld [vmem:[%s491_s17 + $0x14] sm:$0xf0]  ;;  %v382_v2 = vld [vmem:[%s491_s17] sm:$0xf]  ;;  %v411_v44 = vor.u32 %v429_v43, %v410_v42  ;;  %s170_s9 = scalar_lea.vmem %s547_s3, %s420_s6 }
   0xf   : > { %v496_v3 = vor.u32 %v424_v1, %v386_v0  ;;  %v422_v4 = vld [vmem:[%s491_s17 + $0x4] sm:$0xf0]  ;;  %v394_v6 = vld [vmem:[%s491_s17 + $0x20] sm:$0xf]  ;;  %v423_v8 = vld [vmem:[%s491_s17 + $0x14] sm:$0xf] }
  0x10   : > { %v499_v5 = vor.u32 %v422_v4, %v382_v2  ;;  %v426_v7 = vld [vmem:[%s491_s17 + $0x24] sm:$0xf0]  ;;  %v404_v9 = vld [vmem:[%s491_s17 + $0x18] sm:$0xf0]  ;;  %v421_v11 = vld [vmem:[%s491_s17 + $0x4] sm:$0xf] }
  0x11   : > { %236 = vrot.lane.b32.xlu0 %v496_v3, %s453_s18  ;;  %v395_v10 = vor.u32 %v426_v7, %v394_v6  ;;  %v388_v12 = vld [vmem:[%s491_s17 + $0x8] sm:$0xf0]  ;;  %v407_v13 = vor.u32 %v423_v8, %v404_v9  ;;  %v425_v14 = vld [vmem:[%s491_s17 + $0x24] sm:$0xf]  ;;  %v398_v29 = vld [vmem:[%s491_s17 + $0x30] sm:$0xf] }
  0x12   : > { %226 = vrot.lane.b32.xlu1 %v499_v5, %s453_s18  ;;  %v400_v15 = vld [vmem:[%s491_s17 + $0x28] sm:$0xf0]  ;;  %v391_v16 = vor.u32 %v421_v11, %v388_v12  ;;  %v427_v30 = vld [vmem:[%s491_s17 + $0x34] sm:$0xf0] }
  0x13   : > { %220 = vrot.lane.b32.xlu2 %v395_v10, %s454_s19  ;;  %v403_v17 = vor.u32 %v425_v14, %v400_v15  ;;  %v399_v33 = vor.u32 %v427_v30, %v398_v29 }
  0x19   : > { %238 = vrot.lane.b32.xlu0 %v407_v13, %s453_s18 }
  0x1a   : > { %228 = vrot.lane.b32.xlu1 %v391_v16, %s453_s18 }
  0x1b   : > { %222 = vrot.lane.b32.xlu2 %v403_v17, %s454_s19 }
  0x21   : > { %198 = vrot.lane.b32.xlu0 %v499_v5, %s454_s19 }
  0x22   : > { %200 = vrot.lane.b32.xlu1 %v391_v16, %s454_s19 }
  0x23   : > { %242 = vrot.lane.b32.xlu2 %v499_v5, %s455_s20 }
  0x29   : > { %244 = vrot.lane.b32.xlu0 %v391_v16, %s455_s20 }
  0x2a   : > { %255 = vperm.xlu1 %442, %v251_v23  }
  0x2b   : > { %260 = vperm.xlu2 %443, %v252_v24  }
  0x6d   : > { %v221_v20 = vpop.permute.xlu2 %220 }
  0x75   : > { %v223_v28 = vpop.permute.xlu2 %222 }
  0x76   : > { %v224_v32 = vsel %vm202_vm1, %v221_v20, %v223_v28 }
  0x7d   : > { %v243_v34 = vpop.permute.xlu2 %242 }
  0x83   : > { %v237_v18 = vpop.permute.xlu0 %236 }
  0x84   : > { %v227_v19 = vpop.permute.xlu1 %226 }
  0x85   : > { %v261_v51 = vpop.permute.xlu2 %260 }
  0x8b   : > { %v239_v21 = vpop.permute.xlu0 %238 }
  0x8c   : > { %v240_v22 = vsel %vm230_vm0, %v237_v18, %v239_v21  ;;  %v229_v25 = vpop.permute.xlu1 %228 }
  0x8d   : > { %276 = vmatpush.bf16.msra.mxu0 %v240_v22  ;;  %v231_v27 = vsel %vm230_vm0, %v227_v19, %v229_v25 }
  0x91   : > { %277 = vmatpush.bf16.msra.mxu0 %v231_v27 }
  0x93   : > { %v199_v31 = vpop.permute.xlu0 %198 }
  0x94   : > { %v201_v37 = vpop.permute.xlu1 %200 }
  0x95   : > { %278 = vmatpush.bf16.msra.mxu0 %v224_v32  ;;  %v203_v41 = vsel %vm202_vm1, %v199_v31, %v201_v37 }
  0x99   : > { %279 = vmatpush.bf16.msra.mxu0 %v399_v33 }
  0x9b   : > { %v245_v38 = vpop.permute.xlu0 %244 }
  0x9c   : > { %v247_v39 = vsel %vm246_vm2, %v243_v34, %v245_v38  ;;  %v256_v45 = vpop.permute.xlu1 %255 }
  0x9d   : > { %280 = vmatpush.bf16.msra.mxu0 %v395_v10  ;;  %297 = vmatpush.bf16.msra.mxu1 %v247_v39 }
  0xa0   : > { %416 = vmatmul.msk.bf16.vlgmr.msra.gmra.mxu1 %vm272_vm3, %v415_v40 }
  0xa1   : > { %281 = vmatpush.bf16.msra.mxu0 %v203_v41 }
  0xa5   : > { %282 = vmatpush.bf16.msra.mxu0 %v496_v3 }
  0xa9   : > { %283 = vmatpush.bf16.msra.mxu0 %v499_v5 }
  0xac   : > { %284 = vmatmul.bf16.vlgmr.msra.gmra.mxu0 %v411_v44 }
 0x11d   : > { %v299_v46 = vpop.f32.mrf.mxu1 }
 0x125   : > { %v301_v55 = vpop.f32.mrf.mxu1 }
 0x129   : > { %v285_v47 = vpop.f32.mrf.mxu0 }
 0x12a   : > { %v286_v48 = vadd.f32 %v285_v47, %v256_v45 }
 0x12c   : > { %v300_v49 = vadd.f32 %v299_v46, %v286_v48 }
 0x12e   : > { %v304_v50 = vmul.f32 0.2, %v300_v49 }
 0x130   : > { %v306_v52 = vmax.f32 %v300_v49, %v304_v50 }
 0x131   : > { %v287_v53 = vpop.f32.mrf.mxu0 }
 0x132   : > { %308 = vst [vmem:[%s170_s9] sm:$0xff] %v306_v52  ;;  %v288_v54 = vadd.f32 %v287_v53, %v261_v51 }
 0x134   : > { %v302_v56 = vadd.f32 %v301_v55, %v288_v54 }
 0x136   : > { %v305_v57 = vmul.f32 0.2, %v302_v56 }
 0x138   : > { %v307_v58 = vmax.f32 %v302_v56, %v305_v57 }
 0x13a   : > { %309 = vst [vmem:[%s170_s9 + $0x8] sm:$0xff] %v307_v58 }
 0x13b PF: > { %s13_s12 = sadd.s32 1, %s451_s12  }
 0x13c   : > { %p10_p4 = scmp.ge.s32.totalorder %s13_s12, 4  }
 0x13e   :  { %12 = sbr.rel (!%p10_p4) target bundleno = 1 (0x1), region = 65 }

</bundles_post_ra>
